<compile_context>
chip_gen: v7x
topology: tpu7x:2x2x1
jax: 0.10.0
libtpu: 0.0.40
codegen_flags: <defaults>
</compile_context>

<pallas_src>
import functools

import jax
import jax.numpy as jnp
from jax.experimental import pallas as pl
from jax.experimental.pallas import tpu as pltpu


def _edge_enhancer_kernel(x_ref, mask_ref, w_ref, shift_ref, out_ref, *, W, use_mxu):
    TN, C, P = x_ref.shape            # P = padded H*W (multiple of 128)

    lmask = mask_ref[0:1, :]          # (1, P) "neighbour exists" masks
    rmask = mask_ref[1:2, :]
    umask = mask_ref[2:3, :]
    dmask = mask_ref[3:4, :]
    w = w_ref[...]                    # (C, C)  BN scale already folded in
    shift = shift_ref[...]            # (C, 1)  BN shift

    for n in range(TN):               # small static unroll over images in block
        x = x_ref[n].astype(jnp.float32)                     # (C, P)

        # AvgPool2d(3, stride=1, padding=1), count_include_pad=True (/9):
        # separable 1x3 then 3x1 sums; rolls run in the XLU slot, masks zero
        # the taps that fall outside the image (= the implicit zero padding).
        hsum = (x
                + lmask * pltpu.roll(x, 1, axis=1)            # x[r, c-1]
                + rmask * pltpu.roll(x, P - 1, axis=1))       # x[r, c+1]
        vsum = (hsum
                + umask * pltpu.roll(hsum, W, axis=1)         # row r-1
                + dmask * pltpu.roll(hsum, P - W, axis=1))    # row r+1
        edge = x - vsum * (1.0 / 9.0)

        # 1x1 conv + BN (scale folded into w, shift folded into the acc init).
        if use_mxu:
            acc = jnp.dot(w.astype(jnp.bfloat16), edge.astype(jnp.bfloat16),
                          preferred_element_type=jnp.float32) + shift
        else:
            acc = shift
            for i in range(C):
                acc = acc + w[:, i:i + 1] * edge[i:i + 1, :]

        # sigmoid as a single EUP transcendental (no VPU divide).
        e = 0.5 * jnp.tanh(0.5 * acc) + 0.5

        out_ref[n] = (x + e).astype(out_ref.dtype)


def edge_enhancer(x, w, bn_scale, bn_shift, *, block_n=None, mxu_min_c=8):
    """x: (N, C, H, W); w: (C, C) 1x1-conv weight; bn_scale/bn_shift: (C,)."""
    N, C, H, W = x.shape
    P = H * W
    P_pad = ((P + 127) // 128) * 128                   # lane-dense stores

    x_flat = x.reshape(N, C, P)
    if P_pad != P:
        x_flat = jnp.pad(x_flat, ((0, 0), (0, 0), (0, P_pad - P)))

    # Per-lane boundary masks, built once outside the kernel and DMA'd once
    # (constant index_map).  Padded lanes get 0 everywhere so they stay inert.
    p = jnp.arange(P_pad, dtype=jnp.int32)
    col, row, valid = p % W, p // W, p < P
    masks = jnp.stack([
        valid & (col > 0),          # left neighbour exists
        valid & (col < W - 1),      # right
        valid & (row > 0),          # up
        valid & (row < H - 1),      # down
    ]).astype(jnp.float32)                             # (4, P_pad)

    w_scaled = (bn_scale.reshape(C, 1) * w).astype(jnp.float32)   # fold BN scale
    shift = bn_shift.reshape(C, 1).astype(jnp.float32)            # BN shift

    # Batch tile: amortize per-step overhead while keeping double-buffered
    # in/out blocks plus ~6 live f32 (C, P_pad) temporaries under ~8 MiB
    # (safe inside v5e's 16 MiB scoped default and v7x's 64 MiB physical VMEM).
    itemsize = jnp.dtype(x.dtype).itemsize
    bytes_per_image = C * P_pad * (4 * itemsize + 6 * 4)
    if block_n is None:
        block_n = max(1, min(N, 8, (8 * 1024 * 1024) // max(bytes_per_image, 1)))
    grid = (pl.cdiv(N, block_n),)
    # TODO(synk): for very large H*W, add a second "parallel" grid axis that
    # row-tiles P with a one-row (W-lane) halo instead of whole-image blocks.

    kernel = functools.partial(_edge_enhancer_kernel, W=W, use_mxu=C >= mxu_min_c)
    out_flat = pl.pallas_call(
        kernel,
        out_shape=jax.ShapeDtypeStruct((N, C, P_pad), x.dtype),
        grid=grid,
        in_specs=[
            pl.BlockSpec((block_n, C, P_pad), lambda n: (n, 0, 0)),   # x
            pl.BlockSpec((4, P_pad), lambda n: (0, 0)),               # masks
            pl.BlockSpec((C, C), lambda n: (0, 0)),                   # folded weight
            pl.BlockSpec((C, 1), lambda n: (0, 0)),                   # BN shift
        ],
        out_specs=pl.BlockSpec((block_n, C, P_pad), lambda n: (n, 0, 0)),
        compiler_params=pltpu.CompilerParams(
            dimension_semantics=("parallel",),
            vmem_limit_bytes=32 * 1024 * 1024,
        ),
    )(x_flat, masks, w_scaled, shift)

    return out_flat[:, :, :P].reshape(N, C, H, W)


def _reference(x, w, bn_scale, bn_shift):
    N, C, H, W = x.shape
    xp = jnp.pad(x, ((0, 0), (0, 0), (1, 1), (1, 1)))
    pool = jnp.zeros_like(x)
    for dy in range(3):
        for dx in range(3):
            pool = pool + xp[:, :, dy:dy + H, dx:dx + W]
    pool = pool / 9.0
    edge = x - pool
    z = jnp.einsum('oi,nihw->nohw', w, edge,
                   precision=jax.lax.Precision.HIGHEST)
    z = z * bn_scale.reshape(1, C, 1, 1) + bn_shift.reshape(1, C, 1, 1)
    return x + jax.nn.sigmoid(z)


if __name__ == "__main__":
    N, C, H, W = 2, 4, 16, 16
    key = jax.random.PRNGKey(0)
    kx, kw = jax.random.split(key)

    x = jax.random.normal(kx, (N, C, H, W), dtype=jnp.float32)

    # Conv2d(in_dim, in_dim, 1, bias=False) weight: (C_out, C_in, 1, 1) -> (C, C)
    w = jax.random.normal(kw, (C, C), dtype=jnp.float32) * 0.5

    # BatchNorm2d(in_dim) params (eval mode), deterministic synthetic values.
    eps = 1e-5
    gamma = 1.0 + 0.1 * jnp.arange(C, dtype=jnp.float32)
    beta = 0.05 * jnp.arange(C, dtype=jnp.float32) - 0.1
    running_mean = 0.01 * jnp.arange(C, dtype=jnp.float32)
    running_var = 1.0 + 0.02 * jnp.arange(C, dtype=jnp.float32)
    bn_scale = gamma / jnp.sqrt(running_var + eps)
    bn_shift = beta - running_mean * bn_scale

    out = jax.block_until_ready(edge_enhancer(x, w, bn_scale, bn_shift))
    ref = _reference(x, w, bn_scale, bn_shift)

    # EUP tanh-based sigmoid vs XLA's logistic: allow a few ulp of slack.
    assert jnp.allclose(out, ref, atol=1e-4, rtol=1e-4), "mismatch vs reference"

    print("KERNEL_OK")
</pallas_src>

<mosaic_0001>
module attributes {stable_mosaic.version = 11 : i64} {
  func.func @_edge_enhancer_kernel(%arg0: i32, %arg1: memref<2x4x256xf32, #tpu.memory_space<vmem>>, %arg2: memref<4x256xf32, #tpu.memory_space<vmem>>, %arg3: memref<4x4xf32, #tpu.memory_space<vmem>>, %arg4: memref<4x1xf32, #tpu.memory_space<vmem>>, %arg5: memref<2x4x256xf32, #tpu.memory_space<vmem>>) attributes {dimension_semantics = [#tpu.dimension_semantics<parallel>], iteration_bounds = array<i64: 1>, scalar_prefetch = 0 : i64, scratch_operands = 0 : i64, tpu.core_type = #tpu.core_type<tc>, window_params = [{transform_indices = @transform_0, window_bounds = array<i64: 2, 4, 256>}, {pipeline_mode = #tpu.pipeline_mode<synchronous>, transform_indices = @transform_1, window_bounds = array<i64: 4, 256>}, {pipeline_mode = #tpu.pipeline_mode<synchronous>, transform_indices = @transform_2, window_bounds = array<i64: 4, 4>}, {pipeline_mode = #tpu.pipeline_mode<synchronous>, transform_indices = @transform_3, window_bounds = array<i64: 4, 1>}, {transform_indices = @transform_4, window_bounds = array<i64: 2, 4, 256>}]} {
    %c0 = arith.constant 0 : index
    %c0_0 = arith.constant 0 : index
    %0 = vector.load %arg2[%c0, %c0_0] : memref<4x256xf32, #tpu.memory_space<vmem>>, vector<1x256xf32>
    %c1 = arith.constant 1 : index
    %c0_1 = arith.constant 0 : index
    %1 = vector.load %arg2[%c1, %c0_1] : memref<4x256xf32, #tpu.memory_space<vmem>>, vector<1x256xf32>
    %c2 = arith.constant 2 : index
    %c0_2 = arith.constant 0 : index
    %2 = vector.load %arg2[%c2, %c0_2] : memref<4x256xf32, #tpu.memory_space<vmem>>, vector<1x256xf32>
    %c3 = arith.constant 3 : index
    %c0_3 = arith.constant 0 : index
    %3 = vector.load %arg2[%c3, %c0_3] : memref<4x256xf32, #tpu.memory_space<vmem>>, vector<1x256xf32>
    %c0_4 = arith.constant 0 : index
    %c0_5 = arith.constant 0 : index
    %4 = vector.load %arg3[%c0_4, %c0_5] : memref<4x4xf32, #tpu.memory_space<vmem>>, vector<4x4xf32>
    %c0_6 = arith.constant 0 : index
    %c0_7 = arith.constant 0 : index
    %5 = vector.load %arg4[%c0_6, %c0_7] : memref<4x1xf32, #tpu.memory_space<vmem>>, vector<4x1xf32>
    %c0_8 = arith.constant 0 : index
    %c0_9 = arith.constant 0 : index
    %c0_10 = arith.constant 0 : index
    %6 = vector.load %arg1[%c0_8, %c0_9, %c0_10] : memref<2x4x256xf32, #tpu.memory_space<vmem>>, vector<1x4x256xf32>
    %7 = vector.shape_cast %6 : vector<1x4x256xf32> to vector<4x256xf32>
    %c1_i32 = arith.constant 1 : i32
    %8 = tpu.dynamic_rotate %7 by %c1_i32 dim 1 : vector<4x256xf32>, i32 -> vector<4x256xf32>
    %9 = vector.broadcast %0 : vector<1x256xf32> to vector<4x256xf32>
    %10 = arith.mulf %9, %8 : vector<4x256xf32>
    %11 = arith.addf %7, %10 : vector<4x256xf32>
    %c255_i32 = arith.constant 255 : i32
    %12 = tpu.dynamic_rotate %7 by %c255_i32 dim 1 : vector<4x256xf32>, i32 -> vector<4x256xf32>
    %13 = vector.broadcast %1 : vector<1x256xf32> to vector<4x256xf32>
    %14 = arith.mulf %13, %12 : vector<4x256xf32>
    %15 = arith.addf %11, %14 : vector<4x256xf32>
    %c16_i32 = arith.constant 16 : i32
    %16 = tpu.dynamic_rotate %15 by %c16_i32 dim 1 : vector<4x256xf32>, i32 -> vector<4x256xf32>
    %17 = vector.broadcast %2 : vector<1x256xf32> to vector<4x256xf32>
    %18 = arith.mulf %17, %16 : vector<4x256xf32>
    %19 = arith.addf %15, %18 : vector<4x256xf32>
    %c240_i32 = arith.constant 240 : i32
    %20 = tpu.dynamic_rotate %15 by %c240_i32 dim 1 : vector<4x256xf32>, i32 -> vector<4x256xf32>
    %21 = vector.broadcast %3 : vector<1x256xf32> to vector<4x256xf32>
    %22 = arith.mulf %21, %20 : vector<4x256xf32>
    %23 = arith.addf %19, %22 : vector<4x256xf32>
    %cst = arith.constant 0.111111112 : f32
    %24 = vector.broadcast %cst : f32 to vector<4x256xf32>
    %25 = arith.mulf %23, %24 : vector<4x256xf32>
    %26 = arith.subf %7, %25 : vector<4x256xf32>
    %27 = vector.extract_strided_slice %4 {offsets = [0, 0], sizes = [4, 1], strides = [1, 1]} : vector<4x4xf32> to vector<4x1xf32>
    %28 = vector.extract_strided_slice %26 {offsets = [0, 0], sizes = [1, 256], strides = [1, 1]} : vector<4x256xf32> to vector<1x256xf32>
    %29 = vector.broadcast %27 : vector<4x1xf32> to vector<4x256xf32>
    %30 = vector.broadcast %28 : vector<1x256xf32> to vector<4x256xf32>
    %31 = arith.mulf %29, %30 : vector<4x256xf32>
    %32 = vector.broadcast %5 : vector<4x1xf32> to vector<4x256xf32>
    %33 = arith.addf %32, %31 : vector<4x256xf32>
    %34 = vector.extract_strided_slice %4 {offsets = [0, 1], sizes = [4, 1], strides = [1, 1]} : vector<4x4xf32> to vector<4x1xf32>
    %35 = vector.extract_strided_slice %26 {offsets = [1, 0], sizes = [1, 256], strides = [1, 1]} : vector<4x256xf32> to vector<1x256xf32>
    %36 = vector.broadcast %34 : vector<4x1xf32> to vector<4x256xf32>
    %37 = vector.broadcast %35 : vector<1x256xf32> to vector<4x256xf32>
    %38 = arith.mulf %36, %37 : vector<4x256xf32>
    %39 = arith.addf %33, %38 : vector<4x256xf32>
    %40 = vector.extract_strided_slice %4 {offsets = [0, 2], sizes = [4, 1], strides = [1, 1]} : vector<4x4xf32> to vector<4x1xf32>
    %41 = vector.extract_strided_slice %26 {offsets = [2, 0], sizes = [1, 256], strides = [1, 1]} : vector<4x256xf32> to vector<1x256xf32>
    %42 = vector.broadcast %40 : vector<4x1xf32> to vector<4x256xf32>
    %43 = vector.broadcast %41 : vector<1x256xf32> to vector<4x256xf32>
    %44 = arith.mulf %42, %43 : vector<4x256xf32>
    %45 = arith.addf %39, %44 : vector<4x256xf32>
    %46 = vector.extract_strided_slice %4 {offsets = [0, 3], sizes = [4, 1], strides = [1, 1]} : vector<4x4xf32> to vector<4x1xf32>
    %47 = vector.extract_strided_slice %26 {offsets = [3, 0], sizes = [1, 256], strides = [1, 1]} : vector<4x256xf32> to vector<1x256xf32>
    %48 = vector.broadcast %46 : vector<4x1xf32> to vector<4x256xf32>
    %49 = vector.broadcast %47 : vector<1x256xf32> to vector<4x256xf32>
    %50 = arith.mulf %48, %49 : vector<4x256xf32>
    %51 = arith.addf %45, %50 : vector<4x256xf32>
    %cst_11 = arith.constant 5.000000e-01 : f32
    %52 = vector.broadcast %cst_11 : f32 to vector<4x256xf32>
    %53 = arith.mulf %52, %51 : vector<4x256xf32>
    %54 = math.tanh %53 : vector<4x256xf32>
    %cst_12 = arith.constant 5.000000e-01 : f32
    %55 = vector.broadcast %cst_12 : f32 to vector<4x256xf32>
    %56 = arith.mulf %55, %54 : vector<4x256xf32>
    %cst_13 = arith.constant 5.000000e-01 : f32
    %57 = vector.broadcast %cst_13 : f32 to vector<4x256xf32>
    %58 = arith.addf %56, %57 : vector<4x256xf32>
    %59 = arith.addf %7, %58 : vector<4x256xf32>
    %c0_14 = arith.constant 0 : index
    %c0_15 = arith.constant 0 : index
    %c0_16 = arith.constant 0 : index
    %60 = vector.load %arg5[%c0_14, %c0_15, %c0_16] : memref<2x4x256xf32, #tpu.memory_space<vmem>>, vector<1x4x256xf32>
    %61 = vector.shape_cast %60 : vector<1x4x256xf32> to vector<4x256xf32>
    %62 = vector.shape_cast %59 : vector<4x256xf32> to vector<1x4x256xf32>
    tpu.vector_store %arg5[%c0_14, %c0_15, %c0_16], %62 {strides = array<i32>} : memref<2x4x256xf32, #tpu.memory_space<vmem>>, vector<1x4x256xf32>,
    %c1_17 = arith.constant 1 : index
    %c0_18 = arith.constant 0 : index
    %c0_19 = arith.constant 0 : index
    %63 = vector.load %arg1[%c1_17, %c0_18, %c0_19] : memref<2x4x256xf32, #tpu.memory_space<vmem>>, vector<1x4x256xf32>
    %64 = vector.shape_cast %63 : vector<1x4x256xf32> to vector<4x256xf32>
    %c1_i32_20 = arith.constant 1 : i32
    %65 = tpu.dynamic_rotate %64 by %c1_i32_20 dim 1 : vector<4x256xf32>, i32 -> vector<4x256xf32>
    %66 = vector.broadcast %0 : vector<1x256xf32> to vector<4x256xf32>
    %67 = arith.mulf %66, %65 : vector<4x256xf32>
    %68 = arith.addf %64, %67 : vector<4x256xf32>
    %c255_i32_21 = arith.constant 255 : i32
    %69 = tpu.dynamic_rotate %64 by %c255_i32_21 dim 1 : vector<4x256xf32>, i32 -> vector<4x256xf32>
    %70 = vector.broadcast %1 : vector<1x256xf32> to vector<4x256xf32>
    %71 = arith.mulf %70, %69 : vector<4x256xf32>
    %72 = arith.addf %68, %71 : vector<4x256xf32>
    %c16_i32_22 = arith.constant 16 : i32
    %73 = tpu.dynamic_rotate %72 by %c16_i32_22 dim 1 : vector<4x256xf32>, i32 -> vector<4x256xf32>
    %74 = vector.broadcast %2 : vector<1x256xf32> to vector<4x256xf32>
    %75 = arith.mulf %74, %73 : vector<4x256xf32>
    %76 = arith.addf %72, %75 : vector<4x256xf32>
    %c240_i32_23 = arith.constant 240 : i32
    %77 = tpu.dynamic_rotate %72 by %c240_i32_23 dim 1 : vector<4x256xf32>, i32 -> vector<4x256xf32>
    %78 = vector.broadcast %3 : vector<1x256xf32> to vector<4x256xf32>
    %79 = arith.mulf %78, %77 : vector<4x256xf32>
    %80 = arith.addf %76, %79 : vector<4x256xf32>
    %cst_24 = arith.constant 0.111111112 : f32
    %81 = vector.broadcast %cst_24 : f32 to vector<4x256xf32>
    %82 = arith.mulf %80, %81 : vector<4x256xf32>
    %83 = arith.subf %64, %82 : vector<4x256xf32>
    %84 = vector.extract_strided_slice %4 {offsets = [0, 0], sizes = [4, 1], strides = [1, 1]} : vector<4x4xf32> to vector<4x1xf32>
    %85 = vector.extract_strided_slice %83 {offsets = [0, 0], sizes = [1, 256], strides = [1, 1]} : vector<4x256xf32> to vector<1x256xf32>
    %86 = vector.broadcast %84 : vector<4x1xf32> to vector<4x256xf32>
    %87 = vector.broadcast %85 : vector<1x256xf32> to vector<4x256xf32>
    %88 = arith.mulf %86, %87 : vector<4x256xf32>
    %89 = vector.broadcast %5 : vector<4x1xf32> to vector<4x256xf32>
    %90 = arith.addf %89, %88 : vector<4x256xf32>
    %91 = vector.extract_strided_slice %4 {offsets = [0, 1], sizes = [4, 1], strides = [1, 1]} : vector<4x4xf32> to vector<4x1xf32>
    %92 = vector.extract_strided_slice %83 {offsets = [1, 0], sizes = [1, 256], strides = [1, 1]} : vector<4x256xf32> to vector<1x256xf32>
    %93 = vector.broadcast %91 : vector<4x1xf32> to vector<4x256xf32>
    %94 = vector.broadcast %92 : vector<1x256xf32> to vector<4x256xf32>
    %95 = arith.mulf %93, %94 : vector<4x256xf32>
    %96 = arith.addf %90, %95 : vector<4x256xf32>
    %97 = vector.extract_strided_slice %4 {offsets = [0, 2], sizes = [4, 1], strides = [1, 1]} : vector<4x4xf32> to vector<4x1xf32>
    %98 = vector.extract_strided_slice %83 {offsets = [2, 0], sizes = [1, 256], strides = [1, 1]} : vector<4x256xf32> to vector<1x256xf32>
    %99 = vector.broadcast %97 : vector<4x1xf32> to vector<4x256xf32>
    %100 = vector.broadcast %98 : vector<1x256xf32> to vector<4x256xf32>
    %101 = arith.mulf %99, %100 : vector<4x256xf32>
    %102 = arith.addf %96, %101 : vector<4x256xf32>
    %103 = vector.extract_strided_slice %4 {offsets = [0, 3], sizes = [4, 1], strides = [1, 1]} : vector<4x4xf32> to vector<4x1xf32>
    %104 = vector.extract_strided_slice %83 {offsets = [3, 0], sizes = [1, 256], strides = [1, 1]} : vector<4x256xf32> to vector<1x256xf32>
    %105 = vector.broadcast %103 : vector<4x1xf32> to vector<4x256xf32>
    %106 = vector.broadcast %104 : vector<1x256xf32> to vector<4x256xf32>
    %107 = arith.mulf %105, %106 : vector<4x256xf32>
    %108 = arith.addf %102, %107 : vector<4x256xf32>
    %cst_25 = arith.constant 5.000000e-01 : f32
    %109 = vector.broadcast %cst_25 : f32 to vector<4x256xf32>
    %110 = arith.mulf %109, %108 : vector<4x256xf32>
    %111 = math.tanh %110 : vector<4x256xf32>
    %cst_26 = arith.constant 5.000000e-01 : f32
    %112 = vector.broadcast %cst_26 : f32 to vector<4x256xf32>
    %113 = arith.mulf %112, %111 : vector<4x256xf32>
    %cst_27 = arith.constant 5.000000e-01 : f32
    %114 = vector.broadcast %cst_27 : f32 to vector<4x256xf32>
    %115 = arith.addf %113, %114 : vector<4x256xf32>
    %116 = arith.addf %64, %115 : vector<4x256xf32>
    %c1_28 = arith.constant 1 : index
    %c0_29 = arith.constant 0 : index
    %c0_30 = arith.constant 0 : index
    %117 = vector.load %arg5[%c1_28, %c0_29, %c0_30] : memref<2x4x256xf32, #tpu.memory_space<vmem>>, vector<1x4x256xf32>
    %118 = vector.shape_cast %117 : vector<1x4x256xf32> to vector<4x256xf32>
    %119 = vector.shape_cast %116 : vector<4x256xf32> to vector<1x4x256xf32>
    tpu.vector_store %arg5[%c1_28, %c0_29, %c0_30], %119 {strides = array<i32>} : memref<2x4x256xf32, #tpu.memory_space<vmem>>, vector<1x4x256xf32>,
    return
  }
  func.func @transform_0(%arg0: i32) -> (i32, i32, i32) {
    %c0_i32 = arith.constant 0 : i32
    %c0_i32_0 = arith.constant 0 : i32
    %c0_i32_1 = arith.constant 0 : i32
    return %arg0, %c0_i32, %c0_i32_0 : i32, i32, i32
  }
  func.func @transform_1(%arg0: i32) -> (i32, i32) {
    %c0_i32 = arith.constant 0 : i32
    %c0_i32_0 = arith.constant 0 : i32
    %c0_i32_1 = arith.constant 0 : i32
    return %c0_i32, %c0_i32_0 : i32, i32
  }
  func.func @transform_2(%arg0: i32) -> (i32, i32) {
    %c0_i32 = arith.constant 0 : i32
    %c0_i32_0 = arith.constant 0 : i32
    %c0_i32_1 = arith.constant 0 : i32
    return %c0_i32, %c0_i32_0 : i32, i32
  }
  func.func @transform_3(%arg0: i32) -> (i32, i32) {
    %c0_i32 = arith.constant 0 : i32
    %c0_i32_0 = arith.constant 0 : i32
    %c0_i32_1 = arith.constant 0 : i32
    return %c0_i32, %c0_i32_0 : i32, i32
  }
  func.func @transform_4(%arg0: i32) -> (i32, i32, i32) {
    %c0_i32 = arith.constant 0 : i32
    %c0_i32_0 = arith.constant 0 : i32
    %c0_i32_1 = arith.constant 0 : i32
    return %arg0, %c0_i32, %c0_i32_0 : i32, i32, i32
  }
}

</mosaic_0001>

<bundles_post_ra>
// kernel: tpu_custom_call.1
= control target key start
LH: loop header
LB: loop body
LE: loop exit
PB: predicated region body
PF: predicated region fallthrough
CT: control target
= control target key end

     0   :  { %9 = vsyncpa [#allocation3], 0  ;;  %s713_s0 = inlined_call_operand.hbm [shape: f32[2,4,256], index: 0, kind: input, shape index: {}]   ;;  %s714_s1 = inlined_call_operand.vmem [shape: f32[4,256], index: 1, kind: input, shape index: {}]   ;;  %s715_s2 = inlined_call_operand.vmem [shape: f32[4,4], index: 2, kind: input, shape index: {}]   ;;  %s716_s3 = inlined_call_operand.vmem [shape: f32[4,1], index: 3, kind: input, shape index: {}]   ;;  %s717_s4 = inlined_call_operand.hbm [shape: f32[2,4,256], index: 4, kind: output, shape index: {}]  }
   0x1   :  { %10 = vsyncpa [#allocation4], 0  ;;  %s539_s15 = smov [#allocation2]   ;;  %s491_s19 = scalar_lea.hbm %s713_s0, 256 }
   0x2   :  { %s16_s16 = sshll.u32 %s539_s15, 4  ;;  %p492_p0 = scmp.ne.s32.totalorder %s713_s0, %s491_s19  ;;  %s17_s16 = int_to_ptr.vmem [resolvable:$true] %s16_s16 }
   0x3   :  { %p495_p1 = scmp.lt.u32.totalorder %s491_s19, %s713_s0 }
   0x5   :  { %p497_p2 = pnand %p495_p1, %p492_p0 }
   0x7   :  { %500 = shalt.err (!%p497_p2)
}
   0x8   :  { %s501_s24 = scalar_lea.vmem %s17_s16, 256  ;;  %p506_p4 = scmp.lt.s32.totalorder %s17_s16, %s17_s16 }
   0x9   :  { %p502_p3 = scmp.ne.s32.totalorder %s17_s16, %s501_s24  ;;  %p507_p5 = scmp.lt.s32.totalorder %s501_s24, %s501_s24 }
   0xb   :  { %p508_p6 = por %p507_p5, %p506_p4 }
   0xd   :  { %p509_p7 = pnand %p508_p6, %p502_p3 }
   0xf   :  { %512 = shalt.err (!%p509_p7)
}
  0x10   :  { %s540_s25 = smov 128   ;;  %s541_s26 = smov 8  }
  0x11   :  { %22 = dma.hbm_to_vmem [thread:$0]  %s713_s0, 256, %s17_s16, [#allocation3], %s540_s25, %s540_s25, %s541_s26  }
  0x12   :  { %535 = dma.done.wait [#allocation3], 256  }
  0x13   :  { %536 = vsyncadd [#allocation3], 4294967040  ;;  %v591_v0 = vld [vmem:[#allocation2 + $0x8] sm:$0xff]  ;;  %v593_v1 = vld [vmem:[#allocation2] sm:$0xff]  ;;  %s542_s29 = smov 1   ;;  %s543_s30 = smov 127   ;;  %v49_v5 = vlaneseq }
  0x14   :  { %282 = vrot.lane.b32.xlu1 %v591_v0, %s542_s29  ;;  %45 = vrot.lane.b32.xlu0 %v593_v1, %s542_s29  ;;  %v280_v2 = vcombine.high %v591_v0, %v591_v0  ;;  %v43_v3 = vcombine.high %v593_v1, %v593_v1  ;;  %v544_v4 = vmov 0   ;;  %v32_v12 = vld [vmem:[%s714_s1] ss:$4 sm:$0x3]  ;;  %s545_s8 = smov 16   ;;  %s546_s9 = smov 112  }
  0x15   :  { %475 = vset.pattern.permute.xlu0 %v544_v4  ;;  %476 = vset.pattern.permute.xlu1 %v544_v4  ;;  %v603_v6 = vshrl.u32 %v49_v5, 7  ;;  %v605_v7 = vand.u32 127, %v49_v5  ;;  %v460_v17 = vld [vmem:[%s714_s1 + $0x1] ss:$4 sm:$0x3]  ;;  %v547_v52 = vmov 2  }
  0x16   :  { %v39_v50 = vld [vmem:[%s715_s2] sm:$0xf]  ;;  %v548_v53 = vmov 1   ;;  %v549_v54 = vmov 3  }
  0x17   :  { %v608_v10 = vsub.s32 0, %v603_v6  ;;  %v611_v11 = vsub.s32 1, %v603_v6  ;;  %vm51_vm0 = vcmp.lt.s32.totalorder %v605_v7, 1  ;;  %vm76_vm1 = vcmp.lt.s32.totalorder %v605_v7, 127  ;;  %v40_v51 = vld [vmem:[%s716_s3] sm:$0xf] }
  0x18   :  { %284 = vrot.lane.b32.xlu1 %v280_v2, %s542_s29  ;;  %72 = vrot.lane.b32.xlu0 %v593_v1, %s543_s30  ;;  %v461_v55 = vld [vmem:[%s714_s1 + $0x2] ss:$4 sm:$0x3]  ;;  %vm104_vm2 = vcmp.lt.s32.totalorder %v605_v7, 16  ;;  %vm129_vm3 = vcmp.lt.s32.totalorder %v605_v7, 112  ;;  %v221_v7 = vsub.s32 6, %v603_v6 }
  0x19   :  { %v58_v14 = vrot.slane %v32_v12, %v608_v10  ;;  %v62_v15 = vrot.slane %v32_v12, %v611_v11  ;;  %v83_v20 = vrot.slane %v460_v17, %v608_v10  ;;  %v87_v21 = vrot.slane %v460_v17, %v611_v11  ;;  %v462_v63 = vld [vmem:[%s714_s1 + $0x3] ss:$4 sm:$0x3]  ;;  %s550_s1 = smov [#allocation5]  }
  0x1a   :  { %v111_v57 = vrot.slane %v461_v55, %v608_v10  ;;  %v115_v58 = vrot.slane %v461_v55, %v611_v11  ;;  %v136_v12 = vrot.slane %v462_v63, %v608_v10  ;;  %s448_s16 = sshll.u32 %s550_s1, 4  ;;  %s449_s16 = int_to_ptr.vmem [resolvable:$true] %s448_s16 }
  0x1b   :  { %s513_s17 = scalar_lea.vmem %s449_s16, 256  ;;  %p518_p9 = scmp.lt.s32.totalorder %s449_s16, %s449_s16 }
  0x1c   :  { %74 = vrot.lane.b32.xlu1 %v43_v3, %s543_s30  ;;  %47 = vrot.lane.b32.xlu0 %v43_v3, %s542_s29  ;;  %p514_p8 = scmp.ne.s32.totalorder %s449_s16, %s513_s17  ;;  %p519_p10 = scmp.lt.s32.totalorder %s513_s17, %s513_s17 }
  0x1e   :  { %p520_p11 = por %p519_p10, %p518_p9 }
  0x20   :  { %297 = vrot.lane.b32.xlu1 %v280_v2, %s543_s30  ;;  %295 = vrot.lane.b32.xlu0 %v591_v0, %s543_s30  ;;  %p521_p12 = pnand %p520_p11, %p514_p8 }
  0x86   :  { %v283_v8 = vpop.permute.xlu1 %282  ;;  %v46_v9 = vpop.permute.xlu0 %45 }
  0x8a   :  { %v285_v13 = vpop.permute.xlu1 %284  ;;  %v73_v16 = vpop.permute.xlu0 %72 }
  0x8b   :  { %v286_v18 = vsel %vm51_vm0, %v283_v8, %v285_v13  ;;  %v287_v19 = vsel %vm51_vm0, %v285_v13, %v283_v8  ;;  %v140_v13 = vrot.slane %v462_v63, %v611_v11 }
  0x8c   :  { %v288_v22 = vmul.f32 %v287_v19, %v58_v14  ;;  %v289_v23 = vmul.f32 %v286_v18, %v62_v15 }
  0x8e   :  { %v75_v24 = vpop.permute.xlu1 %74  ;;  %v48_v25 = vpop.permute.xlu0 %47  ;;  %v292_v36 = vcombine.low %v288_v22, %v289_v23 }
  0x8f   :  { %v77_v26 = vsel %vm76_vm1, %v73_v16, %v75_v24  ;;  %v78_v27 = vsel %vm76_vm1, %v75_v24, %v73_v16  ;;  %v52_v28 = vsel %vm51_vm0, %v46_v9, %v48_v25  ;;  %v53_v29 = vsel %vm51_vm0, %v48_v25, %v46_v9 }
  0x90   :  { %v65_v30 = vmul.f32 %v58_v14, %v53_v29  ;;  %v90_v31 = vmul.f32 %v83_v20, %v77_v26  ;;  %v91_v32 = vmul.f32 %v87_v21, %v78_v27  ;;  %v66_v33 = vmul.f32 %v62_v15, %v52_v28 }
  0x91   :  { %v294_v45 = vadd.f32 %v292_v36, %v591_v0 }
  0x92   :  { %v298_v34 = vpop.permute.xlu1 %297  ;;  %v296_v35 = vpop.permute.xlu0 %295  ;;  %v69_v37 = vcombine.low %v65_v30, %v66_v33  ;;  %v94_v42 = vcombine.low %v90_v31, %v91_v32 }
  0x93   :  { %v299_v38 = vsel %vm76_vm1, %v296_v35, %v298_v34  ;;  %v300_v39 = vsel %vm76_vm1, %v298_v34, %v296_v35 }
  0x94   :  { %v301_v40 = vmul.f32 %v299_v38, %v83_v20  ;;  %v302_v41 = vmul.f32 %v300_v39, %v87_v21  ;;  %v71_v43 = vadd.f32 %v69_v37, %v593_v1  ;;  %v164_v38 = vsub.s32 4, %v603_v6 }
  0x96   :  { %v305_v44 = vcombine.low %v301_v40, %v302_v41  ;;  %v96_v46 = vadd.f32 %v94_v42, %v71_v43  ;;  %v217_v40 = vsub.s32 2, %v603_v6  ;;  %v195_v41 = vsub.s32 5, %v603_v6 }
  0x98   :  { %v643_v47 = vadd.f32 %v305_v44, %v294_v45  ;;  %100 = vrot.lane.b32.xlu0 %v96_v46, %s545_s8  ;;  %v98_v48 = vcombine.high %v96_v46, %v96_v46 }
  0x9a   :  { %102 = vrot.lane.b32.xlu1 %v98_v48, %s545_s8  ;;  %v309_v49 = vcombine.high %v643_v47, %v643_v47 }
  0x9c   :  { %311 = vrot.lane.b32.xlu0 %v643_v47, %s545_s8 }
  0x9e   :  { %313 = vrot.lane.b32.xlu1 %v309_v49, %s545_s8 }
  0xa0   :  { %125 = vrot.lane.b32.xlu0 %v96_v46, %s546_s9 }
  0xa2   :  { %127 = vrot.lane.b32.xlu1 %v98_v48, %s546_s9  ;;  %v243_v48 = vsub.s32 3, %v603_v6 }
  0xa4   :  { %324 = vrot.lane.b32.xlu0 %v643_v47, %s546_s9 }
  0xa6   :  { %326 = vrot.lane.b32.xlu1 %v309_v49, %s546_s9  ;;  %v247_v49 = vsub.s32 7, %v603_v6 }
  0xa8   :  { %154 = vperm.xlu0 %475, %v39_v50  }
  0xaa   :  { %180 = vperm.xlu1 %476, %v40_v51  }
  0xac   :  { %478 = vset.pattern.permute.xlu0 %v547_v52 }
  0xad   :  { %212 = vperm.xlu0 %478, %v39_v50  }
  0xae   :  { %477 = vset.pattern.permute.xlu1 %v548_v53 }
  0xaf   :  { %186 = vperm.xlu1 %477, %v39_v50  }
  0xb1   :  { %480 = vset.pattern.permute.xlu0 %v549_v54 }
  0xb3   :  { %479 = vset.pattern.permute.xlu1 %v549_v54 }
  0xb4   :  { %238 = vperm.xlu1 %479, %v39_v50  }
 0x10a   :  { %v101_v56 = vpop.permute.xlu0 %100 }
 0x10c   :  { %v103_v59 = vpop.permute.xlu1 %102 }
 0x10d   :  { %v105_v60 = vsel %vm104_vm2, %v101_v56, %v103_v59  ;;  %v106_v61 = vsel %vm104_vm2, %v103_v59, %v101_v56 }
 0x10e   :  { %v312_v62 = vpop.permute.xlu0 %311  ;;  %v118_v2 = vmul.f32 %v111_v57, %v106_v61  ;;  %v119_v3 = vmul.f32 %v115_v58, %v105_v60 }
 0x110   :  { %v314_v4 = vpop.permute.xlu1 %313  ;;  %v122_v14 = vcombine.low %v118_v2, %v119_v3 }
 0x111   :  { %v315_v5 = vsel %vm104_vm2, %v312_v62, %v314_v4  ;;  %v316_v8 = vsel %vm104_vm2, %v314_v4, %v312_v62 }
 0x112   :  { %v126_v9 = vpop.permute.xlu0 %125  ;;  %v317_v15 = vmul.f32 %v316_v8, %v111_v57  ;;  %v318_v16 = vmul.f32 %v315_v5, %v115_v58  ;;  %v124_v22 = vadd.f32 %v122_v14, %v96_v46 }
 0x114   :  { %v128_v17 = vpop.permute.xlu1 %127  ;;  %v321_v23 = vcombine.low %v317_v15, %v318_v16 }
 0x115   :  { %v130_v18 = vsel %vm129_vm3, %v126_v9, %v128_v17  ;;  %v131_v19 = vsel %vm129_vm3, %v128_v17, %v126_v9 }
 0x116   :  { %v143_v20 = vmul.f32 %v136_v12, %v130_v18  ;;  %v144_v21 = vmul.f32 %v140_v13, %v131_v19  ;;  %v325_v25 = vpop.permute.xlu0 %324  ;;  %v323_v32 = vadd.f32 %v321_v23, %v643_v47 }
 0x118   :  { %v147_v24 = vcombine.low %v143_v20, %v144_v21  ;;  %v327_v26 = vpop.permute.xlu1 %326 }
 0x119   :  { %v328_v27 = vsel %vm129_vm3, %v325_v25, %v327_v26  ;;  %v329_v28 = vsel %vm129_vm3, %v327_v26, %v325_v25 }
 0x11a   :  { %v149_v29 = vadd.f32 %v147_v24, %v124_v22  ;;  %v330_v30 = vmul.f32 %v328_v27, %v136_v12  ;;  %v331_v31 = vmul.f32 %v329_v28, %v140_v13 }
 0x11c   :  { %v150_v33 = vmul.f32 0.11111111, %v149_v29  ;;  %v334_v34 = vcombine.low %v330_v30, %v331_v31 }
 0x11e   :  { %v336_v35 = vadd.f32 %v334_v34, %v323_v32  ;;  %v151_v36 = vsub.f32 %v593_v1, %v150_v33 }
 0x120   :  { %v337_v37 = vmul.f32 0.11111111, %v336_v35  ;;  %v161_v42 = vrot.slane %v151_v36, %v608_v10  ;;  %v165_v43 = vrot.slane %v151_v36, %v164_v38  ;;  %v218_v51 = vrot.slane %v151_v36, %v217_v40 }
 0x121   :  { %v222_v52 = vrot.slane %v151_v36, %v221_v7  ;;  %v192_v53 = vrot.slane %v151_v36, %v611_v11  ;;  %v196_v54 = vrot.slane %v151_v36, %v195_v41  ;;  %v244_v8 = vrot.slane %v151_v36, %v243_v48 }
 0x122   :  { %v338_v39 = vsub.f32 %v591_v0, %v337_v37  ;;  %v171_v55 = vrot.slane %v161_v42, %v608_v10  ;;  %v175_v56 = vrot.slane %v165_v43, %v608_v10  ;;  %v228_v3 = vrot.slane %v218_v51, %v217_v40 }
 0x123   :  { %v232_v4 = vrot.slane %v222_v52, %v217_v40  ;;  %v202_v5 = vrot.slane %v192_v53, %v611_v11  ;;  %v206_v13 = vrot.slane %v196_v54, %v611_v11 }
 0x124   :  { %v343_v44 = vrot.slane %v338_v39, %v608_v10  ;;  %v347_v45 = vrot.slane %v338_v39, %v164_v38  ;;  %v387_v57 = vrot.slane %v338_v39, %v217_v40  ;;  %v391_v58 = vrot.slane %v338_v39, %v221_v7 }
 0x125   :  { %v365_v60 = vrot.slane %v338_v39, %v611_v11  ;;  %v369_v61 = vrot.slane %v338_v39, %v195_v41  ;;  %v409_v17 = vrot.slane %v338_v39, %v243_v48  ;;  %v413_v18 = vrot.slane %v338_v39, %v247_v49 }
 0x126   :  { %v353_v46 = vrot.slane %v343_v44, %v608_v10  ;;  %v357_v47 = vrot.slane %v347_v45, %v608_v10  ;;  %v397_v9 = vrot.slane %v387_v57, %v217_v40  ;;  %v401_v12 = vrot.slane %v391_v58, %v217_v40 }
 0x127   :  { %v155_v50 = vpop.permute.xlu0 %154  ;;  %v248_v10 = vrot.slane %v151_v36, %v247_v49  ;;  %v375_v15 = vrot.slane %v365_v60, %v611_v11  ;;  %v379_v16 = vrot.slane %v369_v61, %v611_v11  ;;  %v254_v11 = vrot.slane %v244_v8, %v243_v48 }
 0x128   :  { %v176_v62 = vmul.f32 %v171_v55, %v155_v50  ;;  %v177_v63 = vmul.f32 %v175_v56, %v155_v50  ;;  %v358_v2 = vmul.f32 %v353_v46, %v155_v50  ;;  %v359_v6 = vmul.f32 %v357_v47, %v155_v50 }
 0x129   :  { %v181_v59 = vpop.permute.xlu1 %180  ;;  %v258_v36 = vrot.slane %v248_v10, %v243_v48  ;;  %v419_v37 = vrot.slane %v409_v17, %v243_v48  ;;  %v423_v38 = vrot.slane %v413_v18, %v243_v48 }
 0x12a   :  { %v183_v19 = vadd.f32 %v181_v59, %v176_v62  ;;  %v184_v20 = vadd.f32 %v181_v59, %v177_v63  ;;  %v360_v21 = vadd.f32 %v358_v2, %v181_v59  ;;  %v361_v22 = vadd.f32 %v359_v6, %v181_v59 }
 0x12c   :  { %v213_v14 = vpop.permute.xlu0 %212 }
 0x12d   :  { %v233_v28 = vmul.f32 %v228_v3, %v213_v14  ;;  %v234_v29 = vmul.f32 %v232_v4, %v213_v14  ;;  %v402_v30 = vmul.f32 %v397_v9, %v213_v14  ;;  %v403_v31 = vmul.f32 %v401_v12, %v213_v14 }
 0x12e   :  { %v187_v23 = vpop.permute.xlu1 %186 }
 0x12f   :  { %v207_v24 = vmul.f32 %v202_v5, %v187_v23  ;;  %v208_v25 = vmul.f32 %v206_v13, %v187_v23  ;;  %v380_v26 = vmul.f32 %v375_v15, %v187_v23  ;;  %v381_v27 = vmul.f32 %v379_v16, %v187_v23 }
 0x131   :  { %v209_v32 = vadd.f32 %v207_v24, %v183_v19  ;;  %v210_v33 = vadd.f32 %v208_v25, %v184_v20  ;;  %v382_v34 = vadd.f32 %v380_v26, %v360_v21  ;;  %v383_v35 = vadd.f32 %v381_v27, %v361_v22 }
 0x133   :  { %v235_v39 = vadd.f32 %v233_v28, %v209_v32  ;;  %v236_v40 = vadd.f32 %v234_v29, %v210_v33  ;;  %v404_v7 = vadd.f32 %v402_v30, %v382_v34  ;;  %v405_v41 = vadd.f32 %v403_v31, %v383_v35  ;;  %v239_v42 = vpop.permute.xlu1 %238 }
 0x134   :  { %v259_v43 = vmul.f32 %v254_v11, %v239_v42  ;;  %v260_v44 = vmul.f32 %v258_v36, %v239_v42  ;;  %v424_v45 = vmul.f32 %v419_v37, %v239_v42  ;;  %v425_v46 = vmul.f32 %v423_v38, %v239_v42 }
 0x136   :  { %v261_v47 = vadd.f32 %v259_v43, %v235_v39  ;;  %v262_v49 = vadd.f32 %v260_v44, %v236_v40  ;;  %v426_v50 = vadd.f32 %v424_v45, %v404_v7  ;;  %v427_v51 = vadd.f32 %v425_v46, %v405_v41 }
 0x138   :  { %v263_v52 = vmul.f32 0.5, %v261_v47  ;;  %v264_v53 = vmul.f32 0.5, %v262_v49  ;;  %v428_v54 = vmul.f32 0.5, %v426_v50  ;;  %v429_v55 = vmul.f32 0.5, %v427_v51 }
 0x13a   :  { %483 = vtanh.f32 %v263_v52 }
 0x13b   :  { %485 = vtanh.f32 %v264_v53 }
 0x13c   :  { %487 = vtanh.f32 %v428_v54 }
 0x13d   :  { %489 = vtanh.f32 %v429_v55 }
 0x144   :  { %v484_v48 = vpop.eup %483 }
 0x145   :  { %v486_v56 = vpop.eup %485  ;;  %v267_v57 = vmul.f32 0.5, %v484_v48 }
 0x146   :  { %v488_v58 = vpop.eup %487  ;;  %v268_v59 = vmul.f32 0.5, %v486_v56 }
 0x147   :  { %v490_v60 = vpop.eup %489  ;;  %v432_v61 = vmul.f32 0.5, %v488_v58  ;;  %v269_v62 = vadd.f32 0.5, %v267_v57 }
 0x148   :  { %v433_v63 = vmul.f32 0.5, %v490_v60  ;;  %v270_v2 = vadd.f32 0.5, %v268_v59 }
 0x149   :  { %v434_v6 = vadd.f32 0.5, %v432_v61 }
 0x14a   :  { %v273_v3 = vcombine.low %v269_v62, %v270_v2  ;;  %v435_v4 = vadd.f32 0.5, %v433_v63 }
 0x14c   :  { %v275_v5 = vadd.f32 %v273_v3, %v593_v1  ;;  %v438_v8 = vcombine.low %v434_v6, %v435_v4 }
 0x14e   :  { %276 = vst [vmem:[#allocation5] sm:$0xff] %v275_v5  ;;  %v440_v9 = vadd.f32 %v438_v8, %v591_v0 }
 0x150   :  { %442 = vst [vmem:[#allocation5 + $0x8] sm:$0xff] %v440_v9 }
 0x151   :  { %524 = shalt.err (!%p521_p12)
}
 0x152   :  { %s525_s20 = scalar_lea.hbm %s717_s4, 256 }
 0x153   :  { %p526_p13 = scmp.ne.s32.totalorder %s717_s4, %s525_s20  ;;  %p529_p0 = scmp.lt.u32.totalorder %s525_s20, %s717_s4 }
 0x155   :  { %p531_p1 = pnand %p529_p0, %p526_p13 }
 0x157   :  { %534 = shalt.err (!%p531_p1)
}
 0x158   :  { %454 = dma.vmem_to_hbm [thread:$0]  %s449_s16, 256, %s717_s4, [#allocation4], %s540_s25, %s540_s25, %s541_s26  }
 0x159   :  { %537 = dma.done.wait [#allocation4], 256  }
 0x15a   :  { %538 = vsyncadd [#allocation4], 4294967040 }
 0x15b   :  { %458 = vsyncpa [#allocation3], 1 }
 0x15c   :  { %459 = vsyncpa [#allocation4], 1 }

</bundles_post_ra>
